<compile_context>
chip_gen: v7x
topology: tpu7x:2x2x1
jax: 0.10.0
libtpu: 0.0.40
codegen_flags: <defaults>
</compile_context>

<pallas_src>
import functools
import math

import jax
import jax.numpy as jnp
from jax.experimental import pallas as pl
from jax.experimental.pallas import tpu as pltpu


def _round_up(n, m):
    return ((n + m - 1) // m) * m


def _freq_tile(fpad):
    for t in (512, 256, 128):
        if fpad % t == 0:
            return t
    return fpad


# ----------------------------------------------------------------------------
# Kernel 1: fused GroupNorm + SiLU (group size == 1 path: per-channel stats)
# Used inside ResidualBlock (FFT boundaries prevent fusing further).
# ----------------------------------------------------------------------------
def _gn_silu_kernel(x_ref, g_ref, b_ref, o_ref, *, eps):
    x = x_ref[...]                                          # (C, HW) f32
    mean = jnp.mean(x, axis=-1, keepdims=True)              # (C, 1)
    var = jnp.mean(x * x, axis=-1, keepdims=True) - mean * mean
    y = (x - mean) * jax.lax.rsqrt(var + eps) * g_ref[...] + b_ref[...]
    o_ref[...] = (y * jax.nn.sigmoid(y)).astype(o_ref.dtype)  # SiLU


def groupnorm_silu(x, gamma, beta, *, num_groups=32, eps=1e-5):
    B, C, H, W = x.shape
    assert C % num_groups == 0
    gs = C // num_groups
    HW = H * W
    if gs != 1:
        # TODO(synk): generic group-size path kept in plain JAX (not hit here; all
        # stages use GroupNorm(32, 32) i.e. group size 1).
        xg = x.reshape(B, num_groups, gs, HW).astype(jnp.float32)
        mean = jnp.mean(xg, axis=(2, 3), keepdims=True)
        var = jnp.mean(jnp.square(xg - mean), axis=(2, 3), keepdims=True)
        y = ((xg - mean) * jax.lax.rsqrt(var + eps)).reshape(B, C, H, W)
        y = y * gamma.reshape(1, C, 1, 1) + beta.reshape(1, C, 1, 1)
        return y * jax.nn.sigmoid(y)
    x2 = x.reshape(B, C, HW).astype(jnp.float32)
    g = gamma.reshape(C, 1).astype(jnp.float32)
    b = beta.reshape(C, 1).astype(jnp.float32)
    out = pl.pallas_call(
        functools.partial(_gn_silu_kernel, eps=eps),
        out_shape=jax.ShapeDtypeStruct((B, C, HW), jnp.float32),
        grid=(B,),
        in_specs=[
            pl.BlockSpec((None, C, HW), lambda i: (i, 0, 0)),
            pl.BlockSpec((C, 1), lambda i: (0, 0)),
            pl.BlockSpec((C, 1), lambda i: (0, 0)),
        ],
        out_specs=pl.BlockSpec((None, C, HW), lambda i: (i, 0, 0)),
        compiler_params=pltpu.CompilerParams(dimension_semantics=("parallel",)),
    )(x2, g, b)
    return out.reshape(B, C, H, W)


# ----------------------------------------------------------------------------
# Kernel 2: FourierConv2d spectral channel mixing (rfft half-spectrum)
#   Yf[o, p] = sum_i Xf[i, p] * Wf[o, i, p]   (complex, per frequency p)
# Accumulates over Cin into a (Cout, F_tile) accumulator (no big broadcast temps).
# ----------------------------------------------------------------------------
def _fmix_kernel(xre_ref, xim_ref, wre_ref, wim_ref, yre_ref, yim_ref, *, cin):
    def body(i, carry):
        acc_re, acc_im = carry
        xr = xre_ref[i]                 # (1, F)
        xi = xim_ref[i]                 # (1, F)
        wr = wre_ref[i]                 # (Cout, F)
        wi = wim_ref[i]                 # (Cout, F)
        acc_re = acc_re + xr * wr - xi * wi
        acc_im = acc_im + xr * wi + xi * wr
        return acc_re, acc_im

    zero = jnp.zeros(yre_ref.shape, jnp.float32)
    acc_re, acc_im = jax.lax.fori_loop(0, cin, body, (zero, zero), unroll=True)
    yre_ref[...] = acc_re
    yim_ref[...] = acc_im


def fourier_conv2d(x, params, residual=None):
    # y = irfft2( channel-mix( rfft2(x), rfft2(kernel) ) ) + bias [+ residual]
    wre, wim, bias = params["wre"], params["wim"], params["bias"]
    B, Cin, H, W = x.shape
    Cout = wre.shape[1]
    Wr = W // 2 + 1
    Fr = H * Wr
    Fpad = wre.shape[-1]

    xf = jnp.fft.rfft2(x)                                   # glue: no Pallas FFT
    xre = jnp.real(xf).reshape(B, Cin, 1, Fr).astype(jnp.float32)
    xim = jnp.imag(xf).reshape(B, Cin, 1, Fr).astype(jnp.float32)
    if Fpad > Fr:
        pad = ((0, 0), (0, 0), (0, 0), (0, Fpad - Fr))
        xre = jnp.pad(xre, pad)
        xim = jnp.pad(xim, pad)

    ft = _freq_tile(Fpad)
    nf = Fpad // ft
    yre, yim = pl.pallas_call(
        functools.partial(_fmix_kernel, cin=Cin),
        out_shape=(
            jax.ShapeDtypeStruct((B, Cout, Fpad), jnp.float32),
            jax.ShapeDtypeStruct((B, Cout, Fpad), jnp.float32),
        ),
        grid=(nf, B),                    # freq outer -> weight tile fetched once
        in_specs=[
            pl.BlockSpec((None, Cin, 1, ft), lambda f, b: (b, 0, 0, f)),
            pl.BlockSpec((None, Cin, 1, ft), lambda f, b: (b, 0, 0, f)),
            pl.BlockSpec((Cin, Cout, ft), lambda f, b: (0, 0, f)),
            pl.BlockSpec((Cin, Cout, ft), lambda f, b: (0, 0, f)),
        ],
        out_specs=(
            pl.BlockSpec((None, Cout, ft), lambda f, b: (b, 0, f)),
            pl.BlockSpec((None, Cout, ft), lambda f, b: (b, 0, f)),
        ),
        compiler_params=pltpu.CompilerParams(
            dimension_semantics=("parallel", "parallel"),
            vmem_limit_bytes=48 * 1024 * 1024,
        ),
    )(xre, xim, wre, wim)

    yf = (yre[..., :Fr] + 1j * yim[..., :Fr]).reshape(B, Cout, H, Wr)
    y = jnp.fft.irfft2(yf, s=(H, W))                        # glue: no Pallas IFFT
    y = y + bias
    if residual is not None:
        y = y + residual                                    # fused by XLA with bias add
    return y


# ----------------------------------------------------------------------------
# Kernel 3: fused AttentionBlock body:
#   GN(32, C) + SiLU + packed-QKV projection + single-head attention over the
#   C spatial-token channels + out-projection + residual add, one kernel per batch.
# TODO(synk): SelfAttention / GroupedQueryAttention are undefined in the source;
#             implemented as standard single-head scaled-dot-product attention.
# ----------------------------------------------------------------------------
def _attn_kernel(x_ref, g_ref, b_ref, wqkv_ref, wo_ref, o_ref, *, d, scale, eps):
    x = x_ref[...]                                                    # (C, D) f32
    # --- GroupNorm(group size 1) + SiLU, fused ---
    mean = jnp.mean(x, axis=-1, keepdims=True)
    var = jnp.mean(x * x, axis=-1, keepdims=True) - mean * mean
    h = (x - mean) * jax.lax.rsqrt(var + eps) * g_ref[...] + b_ref[...]
    h = h * jax.nn.sigmoid(h)
    hb = h.astype(jnp.bfloat16)
    # --- packed QKV projection on the MXU ---
    qkv = jnp.dot(hb, wqkv_ref[...], preferred_element_type=jnp.float32)  # (C, 3D)
    q = qkv[:, :d].astype(jnp.bfloat16)
    k = qkv[:, d:2 * d].astype(jnp.bfloat16)
    v = qkv[:, 2 * d:].astype(jnp.bfloat16)
    # --- scaled dot-product attention ---
    s = jnp.dot(q, k.T, preferred_element_type=jnp.float32) * scale       # (C, C)
    s = s - jnp.max(s, axis=-1, keepdims=True)
    p = jnp.exp(s)
    p = p * pl.reciprocal(jnp.sum(p, axis=-1, keepdims=True), approx=True)
    o = jnp.dot(p.astype(jnp.bfloat16), v, preferred_element_type=jnp.float32)
    out = jnp.dot(o.astype(jnp.bfloat16), wo_ref[...],
                  preferred_element_type=jnp.float32)                     # (C, D)
    o_ref[...] = x + out                                                  # fused residual


def attention_block(x, p):
    B, C, H, W = x.shape
    D = H * W
    if C != 32:
        # TODO(synk): fused kernel assumes GroupNorm group size 1 (C == 32); generic
        # fallback kept in plain JAX (not hit in this configuration).
        h = groupnorm_silu(x, p["gn"]["gamma"], p["gn"]["beta"])
        t = h.reshape(B, C, D).astype(jnp.float32)
        qkv = jnp.einsum("bcd,de->bce", t, p["wqkv"].astype(jnp.float32))
        q, k, v = qkv[..., :D], qkv[..., D:2 * D], qkv[..., 2 * D:]
        s = jax.nn.softmax(jnp.einsum("bqd,bkd->bqk", q, k) / math.sqrt(D), axis=-1)
        o = jnp.einsum("bqk,bkd->bqd", s, v)
        o = jnp.einsum("bcd,de->bce", o, p["wo"].astype(jnp.float32))
        return x + o.reshape(x.shape)

    x2 = x.reshape(B, C, D).astype(jnp.float32)
    g = p["gn"]["gamma"].reshape(C, 1).astype(jnp.float32)
    b = p["gn"]["beta"].reshape(C, 1).astype(jnp.float32)
    out = pl.pallas_call(
        functools.partial(_attn_kernel, d=D, scale=1.0 / math.sqrt(D), eps=1e-5),
        out_shape=jax.ShapeDtypeStruct((B, C, D), jnp.float32),
        grid=(B,),
        in_specs=[
            pl.BlockSpec((None, C, D), lambda i: (i, 0, 0)),
            pl.BlockSpec((C, 1), lambda i: (0, 0)),
            pl.BlockSpec((C, 1), lambda i: (0, 0)),
            pl.BlockSpec((D, 3 * D), lambda i: (0, 0)),   # same block every step -> resident
            pl.BlockSpec((D, D), lambda i: (0, 0)),
        ],
        out_specs=pl.BlockSpec((None, C, D), lambda i: (i, 0, 0)),
        compiler_params=pltpu.CompilerParams(
            dimension_semantics=("parallel",),
            vmem_limit_bytes=64 * 1024 * 1024,
        ),
    )(x2, g, b, p["wqkv"], p["wo"])
    return out.reshape(x.shape)


# ----------------------------------------------------------------------------
# Kernel 4: fused UpsamplingFourierDeconvolution:
#   GN+SiLU(enc), GN+SiLU(dec_up), (enc_n + dec_n) * inv_w + bias  -> one pass
# ----------------------------------------------------------------------------
def _ups_fused_kernel(enc_ref, dec_ref, ge_ref, be_ref, gd_ref, bd_ref,
                      invw_ref, bias_ref, o_ref, *, eps):
    def gn_silu(x, g, b):
        mean = jnp.mean(x, axis=-1, keepdims=True)
        var = jnp.mean(x * x, axis=-1, keepdims=True) - mean * mean
        y = (x - mean) * jax.lax.rsqrt(var + eps) * g + b
        return y * jax.nn.sigmoid(y)

    enc_n = gn_silu(enc_ref[...], ge_ref[...], be_ref[...])
    dec_n = gn_silu(dec_ref[...], gd_ref[...], bd_ref[...])
    o_ref[...] = (enc_n + dec_n) * invw_ref[...] + bias_ref[...]


def upsampling_block(x, e_t, p):
    x_up = upsample2x_bilinear(x)
    B, C, H2, W2 = e_t.shape
    HW = H2 * W2
    if C != 32:
        # TODO(synk): fused kernel assumes GroupNorm group size 1 (C == 32);
        # generic fallback kept in plain JAX (not hit in this configuration).
        enc_n = groupnorm_silu(e_t, p["gn_enc"]["gamma"], p["gn_enc"]["beta"])
        dec_n = groupnorm_silu(x_up, p["gn_dec"]["gamma"], p["gn_dec"]["beta"])
        return (enc_n + dec_n) * p["inv_w"].reshape(1, C, H2, W2) + p["bias"]

    enc = e_t.reshape(B, C, HW).astype(jnp.float32)
    dec = x_up.reshape(B, C, HW).astype(jnp.float32)
    ge = p["gn_enc"]["gamma"].reshape(C, 1)
    be = p["gn_enc"]["beta"].reshape(C, 1)
    gd = p["gn_dec"]["gamma"].reshape(C, 1)
    bd = p["gn_dec"]["beta"].reshape(C, 1)
    bias = p["bias"].reshape(C, 1)
    out = pl.pallas_call(
        functools.partial(_ups_fused_kernel, eps=1e-5),
        out_shape=jax.ShapeDtypeStruct((B, C, HW), jnp.float32),
        grid=(B,),
        in_specs=[
            pl.BlockSpec((None, C, HW), lambda i: (i, 0, 0)),
            pl.BlockSpec((None, C, HW), lambda i: (i, 0, 0)),
            pl.BlockSpec((C, 1), lambda i: (0, 0)),
            pl.BlockSpec((C, 1), lambda i: (0, 0)),
            pl.BlockSpec((C, 1), lambda i: (0, 0)),
            pl.BlockSpec((C, 1), lambda i: (0, 0)),
            pl.BlockSpec((C, HW), lambda i: (0, 0)),
            pl.BlockSpec((C, 1), lambda i: (0, 0)),
        ],
        out_specs=pl.BlockSpec((None, C, HW), lambda i: (i, 0, 0)),
        compiler_params=pltpu.CompilerParams(
            dimension_semantics=("parallel",),
            vmem_limit_bytes=48 * 1024 * 1024,
        ),
    )(enc, dec, ge, be, gd, bd, p["inv_w"], bias)
    return out.reshape(B, C, H2, W2)


# ----------------------------------------------------------------------------
# Glue: bilinear 2x upsample (UpsamplingBilinear2d -> align_corners=True)
# ----------------------------------------------------------------------------
def _bilinear_matrix(n_in, n_out):
    i = jnp.arange(n_out)
    if n_in == 1:
        return jnp.ones((n_out, 1), jnp.float32)
    pos = i.astype(jnp.float32) * (n_in - 1) / (n_out - 1)
    lo = jnp.clip(jnp.floor(pos).astype(jnp.int32), 0, n_in - 2)
    frac = pos - lo.astype(jnp.float32)
    A = jnp.zeros((n_out, n_in), jnp.float32)
    A = A.at[i, lo].set(1.0 - frac)
    A = A.at[i, lo + 1].add(frac)
    return A


def upsample2x_bilinear(x):
    B, C, H, W = x.shape
    Ah = _bilinear_matrix(H, 2 * H)
    Aw = _bilinear_matrix(W, 2 * W)
    return jnp.einsum("Hh,bchw,Ww->bcHW", Ah, x, Aw)


# ----------------------------------------------------------------------------
# Parameter init (deterministic, kaiming_normal_(a=sqrt(5)) style)
# ----------------------------------------------------------------------------
def _kaiming(key, shape, fan_in, a=math.sqrt(5)):
    gain = math.sqrt(2.0 / (1.0 + a * a))
    std = gain / math.sqrt(fan_in)
    return (jax.random.normal(key, shape, jnp.float32) * std).astype(jnp.float32)


def _gn_params(c):
    return dict(gamma=jnp.ones((c,), jnp.float32), beta=jnp.zeros((c,), jnp.float32))


def _fourier_conv_params(k1, k2, in_c, out_c, H, W):
    kernel = _kaiming(k1, (out_c, in_c, H, W), in_c * H * W)
    wf = jnp.fft.rfft2(kernel)                       # real kernel -> half spectrum
    Wr = W // 2 + 1
    Fr = H * Wr
    Fpad = _round_up(Fr, 128)                        # lane-dense frequency axis
    wre = jnp.real(wf).reshape(out_c, in_c, Fr)
    wim = jnp.imag(wf).reshape(out_c, in_c, Fr)
    if Fpad > Fr:
        wre = jnp.pad(wre, ((0, 0), (0, 0), (0, Fpad - Fr)))
        wim = jnp.pad(wim, ((0, 0), (0, 0), (0, Fpad - Fr)))
    # (Cin, Cout, Fpad) so the reduction (Cin) is the leading dim in the kernel.
    wre = jnp.transpose(wre, (1, 0, 2)).astype(jnp.float32)
    wim = jnp.transpose(wim, (1, 0, 2)).astype(jnp.float32)
    return dict(wre=wre, wim=wim, bias=_kaiming(k2, (1, out_c, 1, 1), out_c))


def init_decoder_params(key, channel_blocks, H0, W0):
    L = len(channel_blocks) - 1
    pairs = list(zip(channel_blocks[:-1], channel_blocks[1:]))[::-1]
    params = []
    for s in range(L):
        in_c, out_c = pairs[s]
        H, W = H0 * (2 ** s), W0 * (2 ** s)
        key, *ks = jax.random.split(key, 14)
        res = dict(
            gn1=_gn_params(in_c),
            conv1=_fourier_conv_params(ks[0], ks[1], in_c, out_c, H, W),
            gn2=_gn_params(out_c),
            conv2=_fourier_conv_params(ks[2], ks[3], out_c, out_c, H, W),
            residue=None if in_c == out_c
            else _fourier_conv_params(ks[4], ks[5], in_c, out_c, H, W),
        )
        D = H * W
        attn = dict(
            gn=_gn_params(out_c),
            wqkv=jnp.concatenate(
                [_kaiming(ks[6], (D, D), D),
                 _kaiming(ks[7], (D, D), D),
                 _kaiming(ks[8], (D, D), D)], axis=1).astype(jnp.bfloat16),
            wo=_kaiming(ks[9], (D, D), D).astype(jnp.bfloat16),
        )
        H2, W2 = 2 * H, 2 * W
        wk_real = _kaiming(ks[10], (out_c, out_c, H2, W2), out_c * H2 * W2)
        wfft = jnp.fft.fftn(wk_real)
        # TODO(synk): original divides a real (B,C,H,W) tensor by a complex (C,C,H,W)
        # weight (ill-defined broadcast); interpreted as an elementwise per-output-channel
        # divide by the real part of the diagonal of fftn(weight). The reciprocal is
        # precomputed and clamped away from zero to avoid Inf/NaN.
        wspec = jnp.real(wfft)[jnp.arange(out_c), jnp.arange(out_c)]   # (C, H2, W2)
        denom = wspec.reshape(out_c, H2 * W2).astype(jnp.float32) + 1e-6
        denom = jnp.where(jnp.abs(denom) < 1e-3,
                          jnp.where(denom >= 0, 1e-3, -1e-3), denom)
        ups = dict(
            gn_enc=_gn_params(out_c), gn_dec=_gn_params(out_c),
            inv_w=(1.0 / denom).astype(jnp.float32),
            bias=_kaiming(ks[11], (1, out_c, 1, 1), out_c),
        )
        params.append(dict(res=res, attn=attn, ups=ups))
    return params


# ----------------------------------------------------------------------------
# Forward pass
# ----------------------------------------------------------------------------
def residual_block(x, p):
    h = groupnorm_silu(x, p["gn1"]["gamma"], p["gn1"]["beta"])
    h = fourier_conv2d(h, p["conv1"])
    h = groupnorm_silu(h, p["gn2"]["gamma"], p["gn2"]["beta"])
    res = x if p["residue"] is None else fourier_conv2d(x, p["residue"])
    return fourier_conv2d(h, p["conv2"], residual=res)      # residual fused with bias add


def decoder_forward(x, encoder_outputs, params):
    for p, e_t in zip(params, encoder_outputs[::-1]):
        x = residual_block(x, p["res"])
        x = attention_block(x, p["attn"])                    # fully fused (GN+SiLU+attn+res)
        x = upsampling_block(x, e_t, p["ups"])
    return x


# ----------------------------------------------------------------------------
# Main
# ----------------------------------------------------------------------------
if __name__ == "__main__":
    B = 2
    channel_blocks = (32, 32, 32)        # 2 decoder stages, all channels = 32
    H0 = W0 = 8                          # bottleneck resolution

    key = jax.random.PRNGKey(0)
    k_x, k_e1, k_e2, k_p = jax.random.split(key, 4)

    x = jax.random.normal(k_x, (B, 32, H0, W0), jnp.float32)
    # encoder_outputs as passed to Decoder.forward (it reverses them internally):
    encoder_outputs = [
        jax.random.normal(k_e1, (B, 32, 4 * H0, 4 * W0), jnp.float32),  # 32x32
        jax.random.normal(k_e2, (B, 32, 2 * H0, 2 * W0), jnp.float32),  # 16x16
    ]

    params = init_decoder_params(k_p, channel_blocks, H0, W0)

    out = decoder_forward(x, encoder_outputs, params)
    out = jax.block_until_ready(out)
    assert out.shape == (B, 32, 4 * H0, 4 * W0), out.shape
    assert bool(jnp.all(jnp.isfinite(out)))
    print("KERNEL_OK")
</pallas_src>

<mosaic_0001>
module attributes {stable_mosaic.version = 11 : i64} {
  func.func @_gn_silu_kernel(%arg0: i32, %arg1: memref<1x32x64xf32, #tpu.memory_space<vmem>>, %arg2: memref<32x1xf32, #tpu.memory_space<vmem>>, %arg3: memref<32x1xf32, #tpu.memory_space<vmem>>, %arg4: memref<1x32x64xf32, #tpu.memory_space<vmem>>) attributes {dimension_semantics = [#tpu.dimension_semantics<parallel>], iteration_bounds = array<i64: 2>, scalar_prefetch = 0 : i64, scratch_operands = 0 : i64, tpu.core_type = #tpu.core_type<tc>, window_params = [{transform_indices = @transform_0, window_bounds = array<i64: 1, 32, 64>}, {pipeline_mode = #tpu.pipeline_mode<synchronous>, transform_indices = @transform_1, window_bounds = array<i64: 32, 1>}, {pipeline_mode = #tpu.pipeline_mode<synchronous>, transform_indices = @transform_2, window_bounds = array<i64: 32, 1>}, {transform_indices = @transform_3, window_bounds = array<i64: 1, 32, 64>}]} {
    %c0 = arith.constant 0 : index
    %c0_0 = arith.constant 0 : index
    %c0_1 = arith.constant 0 : index
    %0 = vector.load %arg1[%c0, %c0_0, %c0_1] : memref<1x32x64xf32, #tpu.memory_space<vmem>>, vector<1x32x64xf32>
    %1 = vector.shape_cast %0 : vector<1x32x64xf32> to vector<32x64xf32>
    %cst = arith.constant dense<0.000000e+00> : vector<32xf32>
    %2 = vector.multi_reduction <add>, %1, %cst [1] : vector<32x64xf32> to vector<32xf32>
    %3 = vector.shape_cast %2 : vector<32xf32> to vector<32x1xf32>
    %cst_2 = arith.constant 6.400000e+01 : f32
    %4 = vector.broadcast %cst_2 : f32 to vector<32x1xf32>
    %5 = arith.divf %3, %4 : vector<32x1xf32>
    %6 = arith.mulf %1, %1 : vector<32x64xf32>
    %cst_3 = arith.constant dense<0.000000e+00> : vector<32xf32>
    %7 = vector.multi_reduction <add>, %6, %cst_3 [1] : vector<32x64xf32> to vector<32xf32>
    %8 = vector.shape_cast %7 : vector<32xf32> to vector<32x1xf32>
    %cst_4 = arith.constant 6.400000e+01 : f32
    %9 = vector.broadcast %cst_4 : f32 to vector<32x1xf32>
    %10 = arith.divf %8, %9 : vector<32x1xf32>
    %11 = arith.mulf %5, %5 : vector<32x1xf32>
    %12 = arith.subf %10, %11 : vector<32x1xf32>
    %13 = vector.broadcast %5 : vector<32x1xf32> to vector<32x64xf32>
    %14 = arith.subf %1, %13 : vector<32x64xf32>
    %cst_5 = arith.constant 9.99999974E-6 : f32
    %15 = vector.broadcast %cst_5 : f32 to vector<32x1xf32>
    %16 = arith.addf %12, %15 : vector<32x1xf32>
    %17 = math.rsqrt %16 : vector<32x1xf32>
    %18 = vector.broadcast %17 : vector<32x1xf32> to vector<32x64xf32>
    %19 = arith.mulf %14, %18 : vector<32x64xf32>
    %c0_6 = arith.constant 0 : index
    %c0_7 = arith.constant 0 : index
    %20 = vector.load %arg2[%c0_6, %c0_7] : memref<32x1xf32, #tpu.memory_space<vmem>>, vector<32x1xf32>
    %21 = vector.broadcast %20 : vector<32x1xf32> to vector<32x64xf32>
    %22 = arith.mulf %19, %21 : vector<32x64xf32>
    %c0_8 = arith.constant 0 : index
    %c0_9 = arith.constant 0 : index
    %23 = vector.load %arg3[%c0_8, %c0_9] : memref<32x1xf32, #tpu.memory_space<vmem>>, vector<32x1xf32>
    %24 = vector.broadcast %23 : vector<32x1xf32> to vector<32x64xf32>
    %25 = arith.addf %22, %24 : vector<32x64xf32>
    %26 = arith.negf %25 : vector<32x64xf32>
    %27 = math.exp %26 : vector<32x64xf32>
    %cst_10 = arith.constant 1.000000e+00 : f32
    %28 = vector.broadcast %cst_10 : f32 to vector<32x64xf32>
    %29 = arith.addf %28, %27 : vector<32x64xf32>
    %30 = arith.divf %28, %29 : vector<32x64xf32>
    %31 = arith.mulf %25, %30 : vector<32x64xf32>
    %c0_11 = arith.constant 0 : index
    %c0_12 = arith.constant 0 : index
    %c0_13 = arith.constant 0 : index
    %32 = vector.load %arg4[%c0_11, %c0_12, %c0_13] : memref<1x32x64xf32, #tpu.memory_space<vmem>>, vector<1x32x64xf32>
    %33 = vector.shape_cast %32 : vector<1x32x64xf32> to vector<32x64xf32>
    %34 = vector.shape_cast %31 : vector<32x64xf32> to vector<1x32x64xf32>
    tpu.vector_store %arg4[%c0_11, %c0_12, %c0_13], %34 {strides = array<i32>} : memref<1x32x64xf32, #tpu.memory_space<vmem>>, vector<1x32x64xf32>,
    return
  }
  func.func @transform_0(%arg0: i32) -> (i32, i32, i32) {
    %c0_i32 = arith.constant 0 : i32
    %c0_i32_0 = arith.constant 0 : i32
    %c0_i32_1 = arith.constant 0 : i32
    return %arg0, %c0_i32, %c0_i32_0 : i32, i32, i32
  }
  func.func @transform_1(%arg0: i32) -> (i32, i32) {
    %c0_i32 = arith.constant 0 : i32
    %c0_i32_0 = arith.constant 0 : i32
    %c0_i32_1 = arith.constant 0 : i32
    return %c0_i32, %c0_i32_0 : i32, i32
  }
  func.func @transform_2(%arg0: i32) -> (i32, i32) {
    %c0_i32 = arith.constant 0 : i32
    %c0_i32_0 = arith.constant 0 : i32
    %c0_i32_1 = arith.constant 0 : i32
    return %c0_i32, %c0_i32_0 : i32, i32
  }
  func.func @transform_3(%arg0: i32) -> (i32, i32, i32) {
    %c0_i32 = arith.constant 0 : i32
    %c0_i32_0 = arith.constant 0 : i32
    %c0_i32_1 = arith.constant 0 : i32
    return %arg0, %c0_i32, %c0_i32_0 : i32, i32, i32
  }
}

</mosaic_0001>

<bundles_post_ra>
// kernel: tpu_custom_call.1
= control target key start
LH: loop header
LB: loop body
LE: loop exit
PB: predicated region body
PF: predicated region fallthrough
CT: control target
= control target key end

     0   :  { %8 = vsyncpa [#allocation3], 0  ;;  %s736_s0 = inlined_call_operand.vmem [shape: f32[2,32,64], index: 0, kind: input, shape index: {}]   ;;  %s737_s1 = inlined_call_operand.vmem [shape: f32[32,1], index: 1, kind: input, shape index: {}]   ;;  %s738_s2 = inlined_call_operand.vmem [shape: f32[32,1], index: 2, kind: input, shape index: {}]   ;;  %s739_s3 = inlined_call_operand.hbm [shape: f32[2,32,64], index: 3, kind: output, shape index: {}]  }
   0x1   :  { %10 = vsyncpa [#allocation3 + $0x1], 0  ;;  %s573_s12 = smov 0   ;;  %s575_s13 = smov 0  }
   0x2   :  { %s577_s14 = smov 0   ;;  %s579_s15 = smov 0  }
   0x3 LB: > { %s594_s16 = sadd.s32 4294967295, %s547_s15   ;;  %s399_s17 = sadd.s32 4294967294, %s547_s15   ;;  %s547_s15 = sphi %s579_s15, %s745_s15   ;;  %s543_s14 = sphi %s577_s14, %s744_s14   ;;  %s539_s13 = sphi %s575_s13, %s743_s13   ;;  %s535_s12 = sphi %s573_s12, %s742_s12  }
   0x4   : > { %s598_s18 = sadd.s32 1, %s547_s15   ;;  %s91_s19 = sadd.s32 1, %s543_s14 }
   0x5   : > { %s88_s20 = ssub.s32 %s547_s15, %s598_s18  ;;  %p101_p0 = scmp.ne.s32.totalorder %s543_s14, %s539_s13 }
   0x6   : > { %p89_p1 = scmp.eq.s32.totalorder %s88_s20, 0  ;;  %p102_p2 = scmp.eq.s32.totalorder %s594_s16, 1 }
   0x7   : > { %p107_p3 = scmp.ne.s32.totalorder %s539_s13, %s535_s12  ;;  %p108_p4 = scmp.eq.s32.totalorder %s399_s17, 1 }
   0x8   : > { %s609_s21 = scalar_select %p89_p1, %s543_s14, %s91_s19  }
   0x9   : > { %p611_p5 = por %p102_p2, %p101_p0  ;;  %p615_p6 = por %p108_p4, %p107_p3 }
   0xa   : > { %p402_p7 = scmp.ge.s32.totalorder %s547_s15, 1  ;;  %p140_p8 = scmp.lt.s32.totalorder %s547_s15, 3 }
   0xc   : > { %p141_p9 = pnand %p402_p7, %p140_p8 }
   0xd   : > { %p164_p10 = scmp.lt.s32.totalorder (!%p141_p9), %s594_s16, 1  ;;  %v549_v0 = vmov (!%p141_p9), 0   ;;  %vm173_vm0 = vcmask (!%p141_p9), 523264   ;;  %v236_v17 = vld [vmem:[%s737_s1 + $0x8] sm:$0xff] (!%p141_p9)  ;;  %v237_v18 = vld [vmem:[%s737_s1 + $0x10] sm:$0xff] (!%p141_p9)  ;;  %v235_v19 = vld [vmem:[%s737_s1] sm:$0xff] (!%p141_p9) }
   0xe   : > { %144 = sbr.rel (%p141_p9) target bundleno = 254 (0xfe), region = 32  ;;  %460 = vset.pattern.permute.xlu1 (!%p141_p9), %v549_v0  ;;  %459 = vset.pattern.permute.xlu0 (!%p141_p9), %v549_v0  ;;  %v238_v20 = vld [vmem:[%s737_s1 + $0x18] sm:$0xff] (!%p141_p9)  ;;  %v263_v21 = vld [vmem:[%s738_s2] sm:$0xff] (!%p141_p9)  ;;  %v264_v22 = vld [vmem:[%s738_s2 + $0x8] sm:$0xff] (!%p141_p9)  ;;  %s161_s27 = sand.u32 (!%p141_p9), 1, %s539_s13  }
   0xf   : > { %v265_v23 = vld [vmem:[%s738_s2 + $0x10] sm:$0xff] (!%p141_p9)  ;;  %v266_v24 = vld [vmem:[%s738_s2 + $0x18] sm:$0xff] (!%p141_p9)  ;;  %s416_s4 = sshll.u32 (!%p141_p9), %s594_s16, 9  ;;  %s695_s8 = scalar_lea.sflag (!%p141_p9), [#allocation3], %s161_s27 }
  0x10   : > { %s690_s7 = scalar_lea.hbm (!%p141_p9), %s739_s3, %s416_s4 }
  0x15   : > { %s165_s24 = scalar_select %p164_p10, %s594_s16, 1 }
  0x16   : > { %s550_s16 = smov [#allocation2]  }
  0x17   : > { %s415_s25 = sshll.u32 %s165_s24, 5  ;;  %s489_s10 = sshll.u32 %s550_s16, 4  ;;  %s490_s10 = int_to_ptr.vmem [resolvable:$false] %s489_s10 }
  0x18   : > { %s168_s28 = scalar_lea.vmem %s736_s0, %s415_s25  ;;  %s491_s11 = scalar_lea.vmem %s490_s10, 1024 }
  0x19   : > { %v626_v1 = vld [vmem:[%s168_s28 + $0x10] sm:$0xff]  ;;  %v628_v2 = vld [vmem:[%s168_s28] sm:$0xff]  ;;  %v630_v3 = vld [vmem:[%s168_s28 + $0x18] sm:$0xff] }
  0x1a   : > { %v180_v4 = vsel %vm173_vm0, %v626_v1, 0.0  ;;  %v174_v5 = vsel %vm173_vm0, %v628_v2, 0.0  ;;  %v636_v6 = vld [vmem:[%s168_s28 + $0x8] sm:$0xff]  ;;  %v183_v7 = vsel %vm173_vm0, %v630_v3, 0.0  ;;  %v191_v10 = vmul.f32 %v628_v2, %v628_v2  ;;  %s403_s28 = sshll.u32 %s161_s27, 5 }
  0x1b   : > { %181 = vadd.xlane.f32.xlu1 %v180_v4  ;;  %175 = vadd.xlane.f32.xlu0 %v174_v5  ;;  %v177_v8 = vsel %vm173_vm0, %v636_v6, 0.0  ;;  %v192_v9 = vmul.f32 %v636_v6, %v636_v6  ;;  %v194_v13 = vmul.f32 %v630_v3, %v630_v3  ;;  %v193_v14 = vmul.f32 %v626_v1, %v626_v1  ;;  %s163_s29 = scalar_lea.vmem [#allocation2], %s403_s28 }
  0x1c   : > { %v195_v12 = vsel %vm173_vm0, %v191_v10, 0.0  ;;  %s337_s30 = sshll.u32 %s163_s29, 4  ;;  %s692_s30 = int_to_ptr.vmem [resolvable:$true] %s337_s30 }
  0x1d   : > { %v198_v11 = vsel %vm173_vm0, %v192_v9, 0.0  ;;  %v204_v15 = vsel %vm173_vm0, %v194_v13, 0.0  ;;  %v201_v16 = vsel %vm173_vm0, %v193_v14, 0.0  ;;  %s485_s9 = scalar_lea.vmem %s692_s30, 512  ;;  %p492_p0 = scmp.lt.s32.totalorder %s692_s30, %s490_s10 }
  0x1e   : > { %p486_p11 = scmp.ne.s32.totalorder %s692_s30, %s485_s9  ;;  %p493_p1 = scmp.lt.s32.totalorder %s491_s11, %s485_s9 }
  0x1f   : > { %184 = vadd.xlane.f32.xlu1 %v183_v7  ;;  %178 = vadd.xlane.f32.xlu0 %v177_v8 }
  0x20   : > { %p487_p12 = pnand %p486_p11, %p611_p5  ;;  %p494_p2 = por %p493_p1, %p492_p0 }
  0x22   : > { %p488_p13 = pneg %p487_p12 }
  0x23   : > { %199 = vadd.xlane.f32.xlu1 %v198_v11  ;;  %196 = vadd.xlane.f32.xlu0 %v195_v12 }
  0x24   : > { %p495_p3 = pnand %p494_p2, %p488_p13 }
  0x27   : > { %205 = vadd.xlane.f32.xlu1 %v204_v15  ;;  %202 = vadd.xlane.f32.xlu0 %v201_v16 }
  0x38   : > { %246 = vperm.xlu1 %460, %v236_v17  }
  0x3c   : > { %251 = vperm.xlu1 %460, %v237_v18  }
  0x3d   : > { %241 = vperm.xlu0 %459, %v235_v19  }
  0x40   : > { %256 = vperm.xlu1 %460, %v238_v20  }
  0x44   : > { %269 = vperm.xlu1 %460, %v263_v21  }
  0x48   : > { %274 = vperm.xlu1 %460, %v264_v22  }
  0x4c   : > { %279 = vperm.xlu1 %460, %v265_v23  }
  0x50   : > { %284 = vperm.xlu1 %460, %v266_v24  }
  0xa8   : > { %v182_v25 = vpop.xlane.xlu1 %181  ;;  %v176_v26 = vpop.xlane.xlu0 %175 }
  0xa9   : > { %v187_v27 = vmul.f32 0.015625, %v176_v26  ;;  %v189_v33 = vmul.f32 0.015625, %v182_v25 }
  0xab   : > { %v211_v31 = vmul.f32 %v187_v27, %v187_v27  ;;  %v213_v41 = vmul.f32 %v189_v33, %v189_v33  ;;  %v219_v57 = vsub.f32 %v628_v2, %v187_v27  ;;  %v221_v0 = vsub.f32 %v626_v1, %v189_v33 }
  0xac   : > { %v185_v28 = vpop.xlane.xlu1 %184  ;;  %v179_v29 = vpop.xlane.xlu0 %178 }
  0xad   : > { %v188_v30 = vmul.f32 0.015625, %v179_v29  ;;  %v190_v34 = vmul.f32 0.015625, %v185_v28 }
  0xaf   : > { %v212_v32 = vmul.f32 %v188_v30, %v188_v30  ;;  %v214_v42 = vmul.f32 %v190_v34, %v190_v34  ;;  %v220_v58 = vsub.f32 %v636_v6, %v188_v30  ;;  %v222_v12 = vsub.f32 %v630_v3, %v190_v34 }
  0xb0   : > { %v200_v35 = vpop.xlane.xlu1 %199  ;;  %v197_v36 = vpop.xlane.xlu0 %196 }
  0xb1   : > { %v208_v37 = vmul.f32 0.015625, %v200_v35  ;;  %v207_v38 = vmul.f32 0.015625, %v197_v36 }
  0xb3   : > { %v216_v39 = vsub.f32 %v208_v37, %v212_v32  ;;  %v215_v40 = vsub.f32 %v207_v38, %v211_v31 }
  0xb4   : > { %v206_v43 = vpop.xlane.xlu1 %205  ;;  %v203_v44 = vpop.xlane.xlu0 %202 }
  0xb5   : > { %v224_v45 = vadd.f32 1e-05, %v216_v39  ;;  %v223_v46 = vadd.f32 1e-05, %v215_v40  ;;  %v210_v47 = vmul.f32 0.015625, %v206_v43  ;;  %v209_v48 = vmul.f32 0.015625, %v203_v44 }
  0xb7   : > { %461 = vrsqrt.f32 %v224_v45  ;;  %v218_v49 = vsub.f32 %v210_v47, %v214_v42  ;;  %v217_v50 = vsub.f32 %v209_v48, %v213_v41 }
  0xb8   : > { %463 = vrsqrt.f32 %v223_v46  ;;  %v247_v51 = vpop.permute.xlu1 %246 }
  0xb9   : > { %v225_v52 = vadd.f32 1e-05, %v217_v50  ;;  %v226_v53 = vadd.f32 1e-05, %v218_v49 }
  0xbb   : > { %465 = vrsqrt.f32 %v225_v52 }
  0xbc   : > { %v252_v54 = vpop.permute.xlu1 %251  ;;  %467 = vrsqrt.f32 %v226_v53  ;;  %v242_v60 = vpop.permute.xlu0 %241 }
  0xc0   : > { %v257_v55 = vpop.permute.xlu1 %256 }
  0xc1   : > { %v462_v56 = vpop.eup %461 }
  0xc2   : > { %v464_v59 = vpop.eup %463  ;;  %v232_v61 = vmul.f32 %v462_v56, %v220_v58 }
  0xc3   : > { %v231_v62 = vmul.f32 %v464_v59, %v219_v57 }
  0xc4   : > { %v270_v63 = vpop.permute.xlu1 %269  ;;  %v260_v7 = vmul.f32 %v247_v51, %v232_v61 }
  0xc5   : > { %v259_v4 = vmul.f32 %v242_v60, %v231_v62  ;;  %v466_v5 = vpop.eup %465 }
  0xc6   : > { %v233_v8 = vmul.f32 %v466_v5, %v221_v0  ;;  %v468_v10 = vpop.eup %467 }
  0xc7   : > { %v287_v9 = vadd.f32 %v270_v63, %v259_v4  ;;  %v234_v6 = vmul.f32 %v468_v10, %v222_v12 }
  0xc8   : > { %v275_v11 = vpop.permute.xlu1 %274  ;;  %v261_v14 = vmul.f32 %v252_v54, %v233_v8 }
  0xc9   : > { %v406_v13 = vmul.f32 -1.442695, %v287_v9  ;;  %v288_v2 = vadd.f32 %v275_v11, %v260_v7  ;;  %v262_v1 = vmul.f32 %v257_v55, %v234_v6 }
  0xcb   : > { %469 = vpow2.f32 %v406_v13  ;;  %v407_v15 = vmul.f32 -1.442695, %v288_v2 }
  0xcc   : > { %v280_v16 = vpop.permute.xlu1 %279 }
  0xcd   : > { %471 = vpow2.f32 %v407_v15  ;;  %v289_v17 = vadd.f32 %v280_v16, %v261_v14 }
  0xcf   : > { %v408_v18 = vmul.f32 -1.442695, %v289_v17 }
  0xd0   : > { %v285_v19 = vpop.permute.xlu1 %284 }
  0xd1   : > { %473 = vpow2.f32 %v408_v18  ;;  %v290_v20 = vadd.f32 %v285_v19, %v262_v1 }
  0xd3   : > { %v409_v21 = vmul.f32 -1.442695, %v290_v20 }
  0xd5   : > { %v470_v22 = vpop.eup %469  ;;  %475 = vpow2.f32 %v409_v21 }
  0xd6   : > { %v303_v23 = vadd.f32 1.0, %v470_v22 }
  0xd7   : > { %v472_v3 = vpop.eup %471 }
  0xd8   : > { %477 = vrcp.f32 %v303_v23  ;;  %v304_v24 = vadd.f32 1.0, %v472_v3 }
  0xda   : > { %479 = vrcp.f32 %v304_v24 }
  0xdb   : > { %v474_v25 = vpop.eup %473 }
  0xdc   : > { %v305_v26 = vadd.f32 1.0, %v474_v25 }
  0xde   : > { %481 = vrcp.f32 %v305_v26 }
  0xdf   : > { %v476_v27 = vpop.eup %475 }
  0xe0   : > { %v306_v28 = vadd.f32 1.0, %v476_v27 }
  0xe2   : > { %v478_v29 = vpop.eup %477  ;;  %483 = vrcp.f32 %v306_v28 }
  0xe3   : > { %v315_v30 = vmul.f32 %v478_v29, %v287_v9 }
  0xe4   : > { %v480_v31 = vpop.eup %479 }
  0xe5   : > { %319 = vst.msk [vmem:[%s163_s29] sm:$0xff] %vm173_vm0, %v315_v30  ;;  %v316_v32 = vmul.f32 %v480_v31, %v288_v2 }
  0xe7   : > { %320 = vst.msk [vmem:[%s163_s29 + $0x8] sm:$0xff] %vm173_vm0, %v316_v32 }
  0xe8   : > { %v482_v33 = vpop.eup %481 }
  0xe9   : > { %v317_v34 = vmul.f32 %v482_v33, %v289_v17 }
  0xeb   : > { %321 = vst.msk [vmem:[%s163_s29 + $0x10] sm:$0xff] %vm173_vm0, %v317_v34 }
  0xec   : > { %v484_v35 = vpop.eup %483 }
  0xed   : > { %v318_v36 = vmul.f32 %v484_v35, %v290_v20 }
  0xef   : > { %322 = vst.msk [vmem:[%s163_s29 + $0x18] sm:$0xff] %vm173_vm0, %v318_v36 }
  0xf0   : > { %498 = shalt.err (!%p495_p3)
}
  0xf1   : > { %s499_s17 = scalar_lea.hbm %s690_s7, 512  ;;  %s503_s24 = scalar_lea.hbm %s739_s3, 1024 }
  0xf2   : > { %p500_p4 = scmp.ne.s32.totalorder %s690_s7, %s499_s17  ;;  %p504_p9 = scmp.lt.u32.totalorder %s690_s7, %s739_s3 }
  0xf3   : > { %p505_p10 = scmp.lt.u32.totalorder %s503_s24, %s499_s17  ;;  %p507_p12 = scmp.lt.u32.totalorder %s499_s17, %s690_s7 }
  0xf4   : > { %p501_p7 = pnand %p500_p4, %p611_p5 }
  0xf5   : > { %p506_p11 = por %p505_p10, %p504_p9 }
  0xf6   : > { %p502_p8 = pneg %p501_p7 }
  0xf7   : > { %p508_p13 = por %p507_p12, %p506_p11 }
  0xf9   : > { %p509_p0 = pnand %p508_p13, %p502_p8 }
  0xfb   : > { %512 = shalt.err (!%p509_p0)
}
  0xfc   : > { %s551_s27 = smov 128   ;;  %s552_s28 = smov 8  }
  0xfd   : > { %417 = dma.vmem_to_hbm [thread:$0]  (%p611_p5), %s692_s30, 512, %s690_s7, %s695_s8, %s551_s27, %s551_s27, %s552_s28  }
  0xfe PF: > { %p423_p1 = scmp.ge.s32.totalorder %s547_s15, 2  ;;  %s352_s29 = sand.u32 1, %s535_s12  }
  0xff   : > { %s353_s4 = scalar_lea.sflag [#allocation3], %s352_s29 }
 0x100   : > { %p420_p2 = pnand %p423_p1, %p615_p6 }
 0x102   : > { %530 = dma.done.wait (!%p420_p2), %s353_s4, 512  }
 0x103   : > { %532 = vsyncadd (!%p420_p2), %s353_s4, 4294966784  ;;  %p13_p3 = scmp.ge.s32.totalorder %s598_s18, 4   ;;  %s742_s12 = smov %s539_s13 }
 0x104   : > { %s743_s13 = smov %s543_s14  ;;  %s744_s14 = smov %s609_s21 }
 0x105   : > { %s745_s15 = smov %s598_s18  ;;  %15 = sbr.rel (!%p13_p3) target bundleno = 3 (0x3), region = 67 }
 0x10c   :  { %358 = vsyncpa [#allocation3], 1 }
 0x10d   :  { %360 = vsyncpa [#allocation3 + $0x1], 1 }

</bundles_post_ra>
